<compile_context>
chip_gen: v7x
topology: tpu7x:2x2x1
jax: 0.10.0
libtpu: 0.0.40
codegen_flags: <defaults>
</compile_context>

<pallas_src>
import functools

import jax
import jax.numpy as jnp
from jax.experimental import pallas as pl
from jax.experimental.pallas import tpu as pltpu


def _round_up(x, m):
    return (x + m - 1) // m * m


_ROW_TILE = 512  # measured sweet spot for mem-bound row streaming


def _pick_tile(rows):
    # Small problems: one 8-aligned block.  Large: 512-row pipelined tiles.
    return min(_ROW_TILE, _round_up(max(rows, 1), 8))


def _grid_path_kernel(pass_html, grid_ref, wpos_ref, bpos_ref, wemb_ref,
                      bemb_ref, out_ref):
    g = grid_ref[...].astype(jnp.float32)            # [TM, D]
    wp = wpos_ref[...].astype(jnp.float32)           # [D, 4]
    bp = bpos_ref[...].astype(jnp.float32)           # [1, 4]
    we = wemb_ref[...].astype(jnp.float32)           # [4, D]
    be = bemb_ref[...].astype(jnp.float32)           # [1, D]

    # pos(grid): D-contraction on the MXU, f32 accumulate.
    pos_g = jax.nn.sigmoid(
        jnp.dot(g, wp, preferred_element_type=jnp.float32) + bp)   # [TM, 4]

    # emb(pos(grid)): K=4 contraction as 4 broadcast FMAs on the VPU
    # (an MXU push for K=4 would be ~97% idle and lane-sparse).
    acc = be
    for k in range(4):
        acc = acc + pos_g[:, k:k + 1] * we[k:k + 1, :]
    plus = jax.nn.sigmoid(acc)                                      # [TM, D]

    out_ref[...] = (g * jnp.float32(pass_html) + plus).astype(out_ref.dtype)


def _bbox_path_kernel(html_ref, wpos_ref, bpos_ref, bbox_ref):
    h = html_ref[...].astype(jnp.float32)            # [TM, D]
    wp = wpos_ref[...].astype(jnp.float32)           # [D, 4]
    bp = bpos_ref[...].astype(jnp.float32)           # [1, 4]
    bbox_ref[...] = jax.nn.sigmoid(
        jnp.dot(h, wp, preferred_element_type=jnp.float32) + bp
    ).astype(bbox_ref.dtype)


def locator_forward(img, html, grid, params, *, pass_html: bool):
    """img: unused (signature parity with PyTorch forward).
    html: [B, Sh, D], grid: [B, Sg, D] -> (grid_out [B,Sg,D], bbox [B,Sh,4])
    """
    del img  # unused by Locator.forward
    w_pos, b_pos, w_emb, b_emb = params
    B, Sg, D = grid.shape
    _, Sh, _ = html.shape

    grid2d = grid.reshape(B * Sg, D)
    html2d = html.reshape(B * Sh, D)

    wp = w_pos.astype(jnp.float32)                   # [D, 4]
    bp = b_pos.reshape(1, 4).astype(jnp.float32)     # [1, 4]
    we = w_emb.astype(jnp.float32)                   # [4, D]
    be = b_emb.reshape(1, D).astype(jnp.float32)     # [1, D]

    resident = lambda shape: pl.BlockSpec(shape, lambda i: (0,) * len(shape))
    row_spec = lambda tm, width: pl.BlockSpec((tm, width), lambda i: (i, 0))
    cparams = pltpu.CompilerParams(dimension_semantics=("parallel",))

    # -------------------- grid path: grid_out = grid*p + emb(pos(grid)) -----
    rows_g = B * Sg
    tm_g = _pick_tile(rows_g)
    pad_g = _round_up(rows_g, tm_g)
    grid2d_p = (jnp.pad(grid2d, ((0, pad_g - rows_g), (0, 0)))
                if pad_g != rows_g else grid2d)
    itemsize_g = jnp.dtype(grid2d_p.dtype).itemsize

    cost_g = pl.CostEstimate(
        flops=2 * pad_g * D * 4 + 2 * pad_g * 4 * D + pad_g * D * 2,
        transcendentals=pad_g * (4 + D),
        bytes_accessed=2 * pad_g * D * itemsize_g + (D * 4 + 4 + 4 * D + D) * 4,
    )
    grid_out_p = pl.pallas_call(
        functools.partial(_grid_path_kernel, float(int(pass_html))),
        out_shape=jax.ShapeDtypeStruct((pad_g, D), grid.dtype),
        grid=(pad_g // tm_g,),
        in_specs=[
            row_spec(tm_g, D),     # grid rows (streamed / double-buffered)
            resident((D, 4)),      # W_pos (resident)
            resident((1, 4)),      # b_pos
            resident((4, D)),      # W_emb
            resident((1, D)),      # b_emb
        ],
        out_specs=row_spec(tm_g, D),
        compiler_params=cparams,
        cost_estimate=cost_g,
    )(grid2d_p, wp, bp, we, be)
    grid_out2d = grid_out_p[:rows_g]

    # -------------------- html path: bbox = pos(html) -----------------------
    rows_h = B * Sh
    tm_h = _pick_tile(rows_h)
    pad_h = _round_up(rows_h, tm_h)
    html2d_p = (jnp.pad(html2d, ((0, pad_h - rows_h), (0, 0)))
                if pad_h != rows_h else html2d)
    itemsize_h = jnp.dtype(html2d_p.dtype).itemsize

    cost_h = pl.CostEstimate(
        flops=2 * pad_h * D * 4,
        transcendentals=pad_h * 4,
        bytes_accessed=pad_h * D * itemsize_h + pad_h * 4 * 4 + (D * 4 + 4) * 4,
    )
    bbox_p = pl.pallas_call(
        _bbox_path_kernel,
        out_shape=jax.ShapeDtypeStruct((pad_h, 4), jnp.float32),
        grid=(pad_h // tm_h,),
        in_specs=[
            row_spec(tm_h, D),     # html rows (streamed)
            resident((D, 4)),      # W_pos
            resident((1, 4)),      # b_pos
        ],
        out_specs=row_spec(tm_h, 4),
        compiler_params=cparams,
        cost_estimate=cost_h,
    )(html2d_p, wp, bp)
    bbox2d = bbox_p[:rows_h]

    return grid_out2d.reshape(B, Sg, D), bbox2d.reshape(B, Sh, 4)


def init_params(key, d_model):
    """Deterministic synthetic init (shapes match nn.Linear weights)."""
    k1, k2, k3, k4 = jax.random.split(key, 4)
    # pos: Linear(d_model, 4); stored already transposed as [D, 4]
    w_pos = jax.random.uniform(k1, (d_model, 4), jnp.float32, -0.1, 0.1)
    b_pos = jax.random.uniform(k2, (4,), jnp.float32, -0.1, 0.1)
    # emb: Linear(4, d_model); stored as [4, D]
    w_emb = jax.random.uniform(k3, (4, d_model), jnp.float32, -0.1, 0.1)
    b_emb = jax.random.uniform(k4, (d_model,), jnp.float32, -0.1, 0.1)
    return w_pos, b_pos, w_emb, b_emb


def reference_forward(img, html, grid, params, *, pass_html: bool):
    """Pure-JAX reference of the PyTorch forward, for validation."""
    del img
    w_pos, b_pos, w_emb, b_emb = params
    pos = lambda x: jax.nn.sigmoid(x @ w_pos + b_pos)
    emb = lambda x: jax.nn.sigmoid(x @ w_emb + b_emb)
    plus = emb(pos(grid))
    grid_out = grid * float(int(pass_html)) + plus
    bbox = pos(html)
    return grid_out, bbox


if __name__ == "__main__":
    key = jax.random.PRNGKey(0)
    kp, ki, kh, kg = jax.random.split(key, 4)

    B, S, D = 2, 8, 32
    PASS_HTML = True

    params = init_params(kp, D)
    img = jax.random.normal(ki, (B, 4, 16, 16), jnp.float32)   # unused by forward
    html = jax.random.normal(kh, (B, S, D), jnp.float32)
    grid = jax.random.normal(kg, (B, S, D), jnp.float32)

    grid_out, bbox = locator_forward(img, html, grid, params,
                                     pass_html=PASS_HTML)
    jax.block_until_ready((grid_out, bbox))

    ref_grid, ref_bbox = reference_forward(img, html, grid, params,
                                           pass_html=PASS_HTML)
    assert grid_out.shape == (B, S, D) and bbox.shape == (B, S, 4)
    assert jnp.allclose(grid_out, ref_grid, atol=1e-5, rtol=1e-5)
    assert jnp.allclose(bbox.astype(ref_bbox.dtype), ref_bbox,
                        atol=1e-5, rtol=1e-5)

    print("KERNEL_OK")
</pallas_src>

<mosaic_0001>
module attributes {stable_mosaic.version = 11 : i64} {
  func.func @_grid_path_kernel(%arg0: i32, %arg1: memref<16x32xf32, #tpu.memory_space<vmem>>, %arg2: memref<32x4xf32, #tpu.memory_space<vmem>>, %arg3: memref<1x4xf32, #tpu.memory_space<vmem>>, %arg4: memref<4x32xf32, #tpu.memory_space<vmem>>, %arg5: memref<1x32xf32, #tpu.memory_space<vmem>>, %arg6: memref<16x32xf32, #tpu.memory_space<vmem>>) attributes {dimension_semantics = [#tpu.dimension_semantics<parallel>], iteration_bounds = array<i64: 1>, scalar_prefetch = 0 : i64, scratch_operands = 0 : i64, tpu.core_type = #tpu.core_type<tc>, window_params = [{transform_indices = @transform_0, window_bounds = array<i64: 16, 32>}, {pipeline_mode = #tpu.pipeline_mode<synchronous>, transform_indices = @transform_1, window_bounds = array<i64: 32, 4>}, {pipeline_mode = #tpu.pipeline_mode<synchronous>, transform_indices = @transform_2, window_bounds = array<i64: 1, 4>}, {pipeline_mode = #tpu.pipeline_mode<synchronous>, transform_indices = @transform_3, window_bounds = array<i64: 4, 32>}, {pipeline_mode = #tpu.pipeline_mode<synchronous>, transform_indices = @transform_4, window_bounds = array<i64: 1, 32>}, {transform_indices = @transform_5, window_bounds = array<i64: 16, 32>}]} {
    %c0 = arith.constant 0 : index
    %c0_0 = arith.constant 0 : index
    %0 = vector.load %arg1[%c0, %c0_0] : memref<16x32xf32, #tpu.memory_space<vmem>>, vector<16x32xf32>
    %c0_1 = arith.constant 0 : index
    %c0_2 = arith.constant 0 : index
    %1 = vector.load %arg2[%c0_1, %c0_2] : memref<32x4xf32, #tpu.memory_space<vmem>>, vector<32x4xf32>
    %c0_3 = arith.constant 0 : index
    %c0_4 = arith.constant 0 : index
    %2 = vector.load %arg3[%c0_3, %c0_4] : memref<1x4xf32, #tpu.memory_space<vmem>>, vector<1x4xf32>
    %c0_5 = arith.constant 0 : index
    %c0_6 = arith.constant 0 : index
    %3 = vector.load %arg4[%c0_5, %c0_6] : memref<4x32xf32, #tpu.memory_space<vmem>>, vector<4x32xf32>
    %c0_7 = arith.constant 0 : index
    %c0_8 = arith.constant 0 : index
    %4 = vector.load %arg5[%c0_7, %c0_8] : memref<1x32xf32, #tpu.memory_space<vmem>>, vector<1x32xf32>
    %cst = arith.constant dense<0.000000e+00> : vector<16x4xf32>
    %5 = tpu.matmul %0, %1, %cst {dimension_numbers = #tpu.dot_dimension_numbers<[1], [0], [0], [1], [0, 0, 1, 1], [], []>} : vector<16x32xf32>, vector<32x4xf32>, vector<16x4xf32> -> vector<16x4xf32>
    %6 = vector.broadcast %2 : vector<1x4xf32> to vector<16x4xf32>
    %7 = arith.addf %5, %6 : vector<16x4xf32>
    %8 = arith.negf %7 : vector<16x4xf32>
    %9 = math.exp %8 : vector<16x4xf32>
    %cst_9 = arith.constant 1.000000e+00 : f32
    %10 = vector.broadcast %cst_9 : f32 to vector<16x4xf32>
    %11 = arith.addf %10, %9 : vector<16x4xf32>
    %12 = arith.divf %10, %11 : vector<16x4xf32>
    %13 = vector.extract_strided_slice %12 {offsets = [0, 0], sizes = [16, 1], strides = [1, 1]} : vector<16x4xf32> to vector<16x1xf32>
    %14 = vector.extract_strided_slice %3 {offsets = [0, 0], sizes = [1, 32], strides = [1, 1]} : vector<4x32xf32> to vector<1x32xf32>
    %15 = vector.broadcast %13 : vector<16x1xf32> to vector<16x32xf32>
    %16 = vector.broadcast %14 : vector<1x32xf32> to vector<16x32xf32>
    %17 = arith.mulf %15, %16 : vector<16x32xf32>
    %18 = vector.broadcast %4 : vector<1x32xf32> to vector<16x32xf32>
    %19 = arith.addf %18, %17 : vector<16x32xf32>
    %20 = vector.extract_strided_slice %12 {offsets = [0, 1], sizes = [16, 1], strides = [1, 1]} : vector<16x4xf32> to vector<16x1xf32>
    %21 = vector.extract_strided_slice %3 {offsets = [1, 0], sizes = [1, 32], strides = [1, 1]} : vector<4x32xf32> to vector<1x32xf32>
    %22 = vector.broadcast %20 : vector<16x1xf32> to vector<16x32xf32>
    %23 = vector.broadcast %21 : vector<1x32xf32> to vector<16x32xf32>
    %24 = arith.mulf %22, %23 : vector<16x32xf32>
    %25 = arith.addf %19, %24 : vector<16x32xf32>
    %26 = vector.extract_strided_slice %12 {offsets = [0, 2], sizes = [16, 1], strides = [1, 1]} : vector<16x4xf32> to vector<16x1xf32>
    %27 = vector.extract_strided_slice %3 {offsets = [2, 0], sizes = [1, 32], strides = [1, 1]} : vector<4x32xf32> to vector<1x32xf32>
    %28 = vector.broadcast %26 : vector<16x1xf32> to vector<16x32xf32>
    %29 = vector.broadcast %27 : vector<1x32xf32> to vector<16x32xf32>
    %30 = arith.mulf %28, %29 : vector<16x32xf32>
    %31 = arith.addf %25, %30 : vector<16x32xf32>
    %32 = vector.extract_strided_slice %12 {offsets = [0, 3], sizes = [16, 1], strides = [1, 1]} : vector<16x4xf32> to vector<16x1xf32>
    %33 = vector.extract_strided_slice %3 {offsets = [3, 0], sizes = [1, 32], strides = [1, 1]} : vector<4x32xf32> to vector<1x32xf32>
    %34 = vector.broadcast %32 : vector<16x1xf32> to vector<16x32xf32>
    %35 = vector.broadcast %33 : vector<1x32xf32> to vector<16x32xf32>
    %36 = arith.mulf %34, %35 : vector<16x32xf32>
    %37 = arith.addf %31, %36 : vector<16x32xf32>
    %38 = arith.negf %37 : vector<16x32xf32>
    %39 = math.exp %38 : vector<16x32xf32>
    %cst_10 = arith.constant 1.000000e+00 : f32
    %40 = vector.broadcast %cst_10 : f32 to vector<16x32xf32>
    %41 = arith.addf %40, %39 : vector<16x32xf32>
    %42 = arith.divf %40, %41 : vector<16x32xf32>
    %cst_11 = arith.constant 1.000000e+00 : f32
    %43 = vector.broadcast %cst_11 : f32 to vector<16x32xf32>
    %44 = arith.mulf %0, %43 : vector<16x32xf32>
    %45 = arith.addf %44, %42 : vector<16x32xf32>
    %c0_12 = arith.constant 0 : index
    %c0_13 = arith.constant 0 : index
    %46 = vector.load %arg6[%c0_12, %c0_13] : memref<16x32xf32, #tpu.memory_space<vmem>>, vector<16x32xf32>
    tpu.vector_store %arg6[%c0_12, %c0_13], %45 {strides = array<i32>} : memref<16x32xf32, #tpu.memory_space<vmem>>, vector<16x32xf32>,
    return
  }
  func.func @transform_0(%arg0: i32) -> (i32, i32) {
    %c0_i32 = arith.constant 0 : i32
    %c0_i32_0 = arith.constant 0 : i32
    return %arg0, %c0_i32 : i32, i32
  }
  func.func @transform_1(%arg0: i32) -> (i32, i32) {
    %c0_i32 = arith.constant 0 : i32
    %c0_i32_0 = arith.constant 0 : i32
    %c0_i32_1 = arith.constant 0 : i32
    return %c0_i32, %c0_i32_0 : i32, i32
  }
  func.func @transform_2(%arg0: i32) -> (i32, i32) {
    %c0_i32 = arith.constant 0 : i32
    %c0_i32_0 = arith.constant 0 : i32
    %c0_i32_1 = arith.constant 0 : i32
    return %c0_i32, %c0_i32_0 : i32, i32
  }
  func.func @transform_3(%arg0: i32) -> (i32, i32) {
    %c0_i32 = arith.constant 0 : i32
    %c0_i32_0 = arith.constant 0 : i32
    %c0_i32_1 = arith.constant 0 : i32
    return %c0_i32, %c0_i32_0 : i32, i32
  }
  func.func @transform_4(%arg0: i32) -> (i32, i32) {
    %c0_i32 = arith.constant 0 : i32
    %c0_i32_0 = arith.constant 0 : i32
    %c0_i32_1 = arith.constant 0 : i32
    return %c0_i32, %c0_i32_0 : i32, i32
  }
  func.func @transform_5(%arg0: i32) -> (i32, i32) {
    %c0_i32 = arith.constant 0 : i32
    %c0_i32_0 = arith.constant 0 : i32
    return %arg0, %c0_i32 : i32, i32
  }
}

</mosaic_0001>

<bundles_post_ra>
// kernel: tpu_custom_call.1
= control target key start
LH: loop header
LB: loop body
LE: loop exit
PB: predicated region body
PF: predicated region fallthrough
CT: control target
= control target key end

     0   :  { %vm36_vm0 = vcmask 261120   ;;  %s409_s0 = inlined_call_operand.vmem [shape: f32[16,32], index: 0, kind: input, shape index: {}]   ;;  %s410_s1 = inlined_call_operand.vmem [shape: f32[32,4], index: 1, kind: input, shape index: {}]   ;;  %s411_s2 = inlined_call_operand.vmem [shape: f32[1,4], index: 2, kind: input, shape index: {}]   ;;  %s412_s3 = inlined_call_operand.vmem [shape: f32[4,32], index: 3, kind: input, shape index: {}]   ;;  %s413_s4 = inlined_call_operand.vmem [shape: f32[1,32], index: 4, kind: input, shape index: {}]   ;;  %s414_s5 = inlined_call_operand.hbm [shape: f32[16,32], index: 5, kind: output, shape index: {}]  }
   0x1   :  { %v23_v0 = vld [vmem:[%s410_s1] sm:$0xff]  ;;  %v24_v1 = vld [vmem:[%s410_s1 + $0x8] sm:$0xff]  ;;  %v25_v2 = vld [vmem:[%s410_s1 + $0x10] sm:$0xff] }
   0x2   :  { %v259_v3 = vpack.c.bf16 %v24_v1, %v23_v0  ;;  %v26_v4 = vld [vmem:[%s410_s1 + $0x18] sm:$0xff]  ;;  %v373_v5 = vld [vmem:[%s409_s0] sm:$0xff] }
   0x3   :  { %v263_v6 = vpack.c.bf16 %v26_v4, %v25_v2  ;;  %256 = vmatprep.mubr.msk.f32.mxu0 %vm36_vm0, %v373_v5 }
   0x4   :  { %10 = vsyncpa [#allocation3], 0  ;;  %260 = vmatprep.subr.bf16.mxu0 %v259_v3  ;;  %v380_v7 = vld [vmem:[%s409_s0 + $0x8] sm:$0xff]  ;;  %v321_v8 = vmov 1   ;;  %v322_v9 = vmov 0   ;;  %v323_v23 = vmov 2   ;;  %v140_v25 = vlaneseq }
   0x5   :  { %262 = vmatpush3.bf16.msra.mxu0 %v259_v3  ;;  %275 = vset.pattern.permute.xlu1 %v321_v8  ;;  %v234_v10 = vld [vmem:[%s411_s2] ss:$0 sm:$0xff]  ;;  %v324_v24 = vmov 3  }
   0x6   :  { %264 = vmatprep.subr.bf16.mxu0 %v263_v6  ;;  %274 = vset.pattern.permute.xlu0 %v322_v9  ;;  %v141_v26 = vshrl.u32 %v140_v25, 7  ;;  %v28_v28 = vld [vmem:[%s412_s3] sm:$0xf]  ;;  %s325_s3 = smov [#allocation2]  }
   0x7   :  { %v239_v35 = vld [vmem:[%s413_s4] ss:$0 sm:$0xff]  ;;  %s223_s4 = sshll.u32 %s325_s3, 4  ;;  %s224_s4 = int_to_ptr.vmem [resolvable:$true] %s223_s4 }
   0x8   :  { %v142_v27 = vsub.s32 0, %v141_v26  ;;  %v164_v32 = vsub.s32 1, %v141_v26  ;;  %v180_v34 = vsub.s32 2, %v141_v26  ;;  %v196_v39 = vsub.s32 3, %v141_v26  ;;  %s297_s8 = scalar_lea.vmem %s224_s4, 256  ;;  %p302_p1 = scmp.lt.s32.totalorder %s224_s4, %s224_s4 }
   0x9   :  { %266 = vmatpush3.bf16.msra.mxu0 %v263_v6  ;;  %p298_p0 = scmp.ne.s32.totalorder %s224_s4, %s297_s8  ;;  %p303_p2 = scmp.lt.s32.totalorder %s297_s8, %s297_s8 }
   0xa   :  { %v143_v29 = vrot.slane %v28_v28, %v142_v27  ;;  %v165_v37 = vrot.slane %v28_v28, %v164_v32  ;;  %v181_v42 = vrot.slane %v28_v28, %v180_v34  ;;  %v197_v46 = vrot.slane %v28_v28, %v196_v39 }
   0xb   :  { %p304_p3 = por %p303_p2, %p302_p1 }
   0xc   :  { %257 = vmatmul.mubr.msk.f32.vlgmr.msra.gmra.mrb[0].mxu0 %vm36_vm0, %v380_v7 }
   0xd   :  { %p305_p4 = pnand %p304_p3, %p298_p0 }
  0xdf   :  { %v258_v11 = vpop.f32.mrb[0].mxu0 }
  0xe0   :  { %v115_v12 = vadd.f32 %v258_v11, %v234_v10  ;;  %v109_v13 = vpop.f32.mrb[1].mxu0 }
  0xe1   :  { %v110_v14 = vadd.f32 %v234_v10, %v109_v13 }
  0xe2   :  { %v238_v15 = vmul.f32 -1.442695, %v115_v12 }
  0xe3   :  { %v237_v16 = vmul.f32 -1.442695, %v110_v14 }
  0xe4   :  { %281 = vpow2.f32 %v238_v15 }
  0xe5   :  { %283 = vpow2.f32 %v237_v16 }
  0xee   :  { %v282_v17 = vpop.eup %281 }
  0xef   :  { %v284_v18 = vpop.eup %283  ;;  %v125_v19 = vadd.f32 1.0, %v282_v17 }
  0xf0   :  { %v124_v20 = vadd.f32 1.0, %v284_v18 }
  0xf1   :  { %285 = vrcp.f32 %v125_v19 }
  0xf2   :  { %287 = vrcp.f32 %v124_v20 }
  0xfb   :  { %v286_v21 = vpop.eup %285 }
  0xfc   :  { %159 = vperm.xlu1 %275, %v286_v21   ;;  %137 = vperm.xlu0 %274, %v286_v21   ;;  %v288_v22 = vpop.eup %287 }
 0x100   :  { %276 = vset.pattern.permute.xlu1 %v323_v23  ;;  %132 = vperm.xlu0 %274, %v288_v22  }
 0x101   :  { %175 = vperm.xlu1 %276, %v286_v21  }
 0x104   :  { %278 = vset.pattern.permute.xlu0 %v323_v23 }
 0x105   :  { %277 = vset.pattern.permute.xlu1 %v321_v8  ;;  %171 = vperm.xlu0 %278, %v288_v22  }
 0x106   :  { %155 = vperm.xlu1 %277, %v288_v22  }
 0x109   :  { %280 = vset.pattern.permute.xlu0 %v324_v24 }
 0x10a   :  { %279 = vset.pattern.permute.xlu1 %v324_v24  ;;  %191 = vperm.xlu0 %280, %v286_v21  }
 0x10b   :  { %187 = vperm.xlu1 %279, %v288_v22  }
 0x17b   :  { %v160_v30 = vpop.permute.xlu1 %159  ;;  %v138_v31 = vpop.permute.xlu0 %137 }
 0x17c   :  { %v145_v33 = vmul.f32 %v143_v29, %v138_v31  ;;  %v167_v43 = vmul.f32 %v165_v37, %v160_v30 }
 0x17e   :  { %v153_v40 = vadd.f32 %v239_v35, %v145_v33 }
 0x17f   :  { %v133_v36 = vpop.permute.xlu0 %132 }
 0x180   :  { %v176_v38 = vpop.permute.xlu1 %175  ;;  %v144_v41 = vmul.f32 %v143_v29, %v133_v36  ;;  %v169_v48 = vadd.f32 %v167_v43, %v153_v40 }
 0x181   :  { %v183_v49 = vmul.f32 %v181_v42, %v176_v38 }
 0x182   :  { %v152_v47 = vadd.f32 %v239_v35, %v144_v41 }
 0x183   :  { %v185_v54 = vadd.f32 %v183_v49, %v169_v48 }
 0x184   :  { %v172_v44 = vpop.permute.xlu0 %171 }
 0x185   :  { %v156_v45 = vpop.permute.xlu1 %155  ;;  %v182_v51 = vmul.f32 %v181_v42, %v172_v44 }
 0x186   :  { %v166_v50 = vmul.f32 %v165_v37, %v156_v45 }
 0x188   :  { %v168_v52 = vadd.f32 %v166_v50, %v152_v47 }
 0x189   :  { %v192_v53 = vpop.permute.xlu0 %191 }
 0x18a   :  { %v199_v55 = vmul.f32 %v197_v46, %v192_v53  ;;  %v188_v56 = vpop.permute.xlu1 %187  ;;  %v184_v57 = vadd.f32 %v182_v51, %v168_v52 }
 0x18b   :  { %v198_v58 = vmul.f32 %v197_v46, %v188_v56 }
 0x18c   :  { %v201_v59 = vadd.f32 %v199_v55, %v185_v54 }
 0x18d   :  { %v200_v60 = vadd.f32 %v198_v58, %v184_v57 }
 0x18e   :  { %v241_v61 = vmul.f32 -1.442695, %v201_v59 }
 0x18f   :  { %v240_v62 = vmul.f32 -1.442695, %v200_v60 }
 0x190   :  { %289 = vpow2.f32 %v241_v61 }
 0x191   :  { %291 = vpow2.f32 %v240_v62 }
 0x19a   :  { %v290_v63 = vpop.eup %289 }
 0x19b   :  { %v292_v0 = vpop.eup %291  ;;  %v209_v1 = vadd.f32 1.0, %v290_v63 }
 0x19c   :  { %v208_v2 = vadd.f32 1.0, %v292_v0 }
 0x19d   :  { %293 = vrcp.f32 %v209_v1 }
 0x19e   :  { %295 = vrcp.f32 %v208_v2 }
 0x1a7   :  { %v294_v3 = vpop.eup %293 }
 0x1a8   :  { %v296_v4 = vpop.eup %295  ;;  %v215_v6 = vadd.f32 %v294_v3, %v380_v7 }
 0x1a9   :  { %v214_v8 = vadd.f32 %v296_v4, %v373_v5 }
 0x1aa   :  { %217 = vst.msk [vmem:[#allocation2 + $0x8] sm:$0xff] %vm36_vm0, %v215_v6 }
 0x1ab   :  { %216 = vst.msk [vmem:[#allocation2] sm:$0xff] %vm36_vm0, %v214_v8 }
 0x1ac   :  { %308 = shalt.err (!%p305_p4)
}
 0x1ad   :  { %s309_s11 = scalar_lea.hbm %s414_s5, 256 }
 0x1ae   :  { %p310_p5 = scmp.ne.s32.totalorder %s414_s5, %s309_s11  ;;  %p313_p6 = scmp.lt.u32.totalorder %s309_s11, %s414_s5 }
 0x1b0   :  { %p315_p7 = pnand %p313_p6, %p310_p5 }
 0x1b2   :  { %318 = shalt.err (!%p315_p7)
}
 0x1b3   :  { %s326_s16 = smov 128   ;;  %s327_s17 = smov 8  }
 0x1b4   :  { %229 = dma.vmem_to_hbm [thread:$0]  %s224_s4, 256, %s414_s5, [#allocation3], %s326_s16, %s326_s16, %s327_s17  }
 0x1b5   :  { %319 = dma.done.wait [#allocation3], 256  }
 0x1b6   :  { %320 = vsyncadd [#allocation3], 4294967040 }
 0x1b7   :  { %233 = vsyncpa [#allocation3], 1 }

</bundles_post_ra>
